<compile_context>
chip_gen: v5e
topology: v5e:2x2
jax: 0.10.0
libtpu: 0.0.40
codegen_flags: <defaults>
</compile_context>

<pallas_src>
import jax
import jax.numpy as jnp
from jax.experimental import pallas as pl
from jax.experimental.pallas import tpu as pltpu


def _focus_conv_kernel(p_ref, w_ref, b_ref, o_ref):
    # p_ref: (1, TR, 128)   bf16 im2col patches (K=108, zero-padded to 128)
    # w_ref: (128, Cp)      bf16 conv weight with BN scale folded in
    # b_ref: (1, Cp)        f32 folded BatchNorm bias
    # o_ref: (1, TR, Cp)    f32 output tile (Cp = Cout padded to 128)
    acc = jnp.dot(p_ref[0], w_ref[...],
                  preferred_element_type=jnp.float32)   # single K=128 matmul
    z = acc + b_ref[...]                                # folded BN bias
    z = z * jax.nn.sigmoid(z)                           # SiLU
    o_ref[0] = z.astype(o_ref.dtype)


def _round_up(x, m):
    return (x + m - 1) // m * m


def gconv_focus_forward(x, conv_w, bn_gamma, bn_beta, bn_mean, bn_var,
                        eps=1e-5):
    """x: (N, 3, H, W) f32 NCHW.  conv_w: (Cout, 12, 3, 3) OIHW."""
    N, C, H, W = x.shape
    assert C == 3, "groups=3 focus convs require 3 input channels"
    assert H % 2 == 0 and W % 2 == 0, "focus sampling requires even H and W"
    Ho, Wo = H // 2, W // 2
    Cout = conv_w.shape[0]
    Kp = 128                                   # 9*12 = 108 -> pad to 128
    Cp = _round_up(Cout, 128)                  # lane-dense output channels

    # --- space-to-depth (the 4 one-hot grouped convs), NHWC, one pass ------
    x_nhwc = jnp.transpose(x, (0, 2, 3, 1))                # (N, H, W, 3)
    xr = x_nhwc.reshape(N, Ho, 2, Wo, 2, 3)                # (N,Ho,hh,Wo,ww,3)
    # channel order must match torch.cat([conv1, conv2, conv3, conv4], dim=1)
    y = jnp.stack([xr[:, :, 0, :, 0, :],     # conv1: (hh=0, ww=0)
                   xr[:, :, 1, :, 0, :],     # conv2: (hh=1, ww=0)
                   xr[:, :, 0, :, 1, :],     # conv3: (hh=0, ww=1)
                   xr[:, :, 1, :, 1, :]],    # conv4: (hh=1, ww=1)
                  axis=3)                                  # (N,Ho,Wo,4,3)
    y = y.reshape(N, Ho, Wo, 12)

    # --- im2col for the 3x3 / stride-1 / pad-1 conv, lane-dense K ----------
    y_pad = jnp.pad(y, ((0, 0), (1, 1), (1, 1), (0, 0)))
    patches = jnp.concatenate(
        [y_pad[:, kh:kh + Ho, kw:kw + Wo, :]
         for kh in range(3) for kw in range(3)],
        axis=-1)                                           # (N,Ho,Wo,108)
    patches = jnp.pad(patches, ((0, 0), (0, 0), (0, 0), (0, Kp - 108)))
    patches = patches.astype(jnp.bfloat16)

    # --- flatten spatial dims + pad rows to a multiple of the row tile -----
    R = Ho * Wo
    TR = min(4096, _round_up(R, 8))            # rows per tile (mult of 8)
    Rp = _round_up(R, TR)
    patches = patches.reshape(N, R, Kp)
    if Rp != R:
        patches = jnp.pad(patches, ((0, 0), (0, Rp - R), (0, 0)))

    # --- weights: OIHW -> HWIO, fold BN scale, flatten, pad, bf16 ----------
    scale = bn_gamma / jnp.sqrt(bn_var + eps)              # (Cout,)
    bias = bn_beta - bn_mean * scale                       # (Cout,)
    w_hwio = jnp.transpose(conv_w, (2, 3, 1, 0)).astype(jnp.float32)
    w_hwio = w_hwio * scale[None, None, None, :]           # BN scale folded
    w_flat = w_hwio.reshape(9 * 12, Cout)                  # k = kh*36+kw*12+ci
    w_flat = jnp.pad(w_flat, ((0, Kp - 108), (0, Cp - Cout)))
    w_flat = w_flat.astype(jnp.bfloat16)
    bias_p = jnp.pad(bias, (0, Cp - Cout)).reshape(1, Cp).astype(jnp.float32)

    # --- row-tiled Pallas call ---------------------------------------------
    grid = (N, Rp // TR)

    out_padded = pl.pallas_call(
        _focus_conv_kernel,
        out_shape=jax.ShapeDtypeStruct((N, Rp, Cp), jnp.float32),
        grid=grid,
        in_specs=[
            pl.BlockSpec((1, TR, Kp), lambda n, r: (n, r, 0)),
            pl.BlockSpec((Kp, Cp), lambda n, r: (0, 0)),
            pl.BlockSpec((1, Cp), lambda n, r: (0, 0)),
        ],
        out_specs=pl.BlockSpec((1, TR, Cp), lambda n, r: (n, r, 0)),
        compiler_params=pltpu.CompilerParams(
            dimension_semantics=("parallel", "parallel"),
            vmem_limit_bytes=32 * 1024 * 1024),
    )(patches, w_flat, bias_p)

    out = out_padded[:, :R, :Cout].reshape(N, Ho, Wo, Cout)
    return jnp.transpose(out, (0, 3, 1, 2))         # back to NCHW


def reference_forward(x, conv_w, bn_gamma, bn_beta, bn_mean, bn_var, eps=1e-5):
    """Pure-JAX f32 reference of the same forward pass."""
    conv1 = x[:, :, 0::2, 0::2]
    conv2 = x[:, :, 1::2, 0::2]
    conv3 = x[:, :, 0::2, 1::2]
    conv4 = x[:, :, 1::2, 1::2]
    y = jnp.concatenate([conv1, conv2, conv3, conv4], axis=1)
    out = jax.lax.conv_general_dilated(
        y, conv_w, window_strides=(1, 1), padding=((1, 1), (1, 1)),
        dimension_numbers=("NCHW", "OIHW", "NCHW"))
    scale = bn_gamma / jnp.sqrt(bn_var + eps)
    shift = bn_beta - bn_mean * scale
    out = out * scale[None, :, None, None] + shift[None, :, None, None]
    return out * jax.nn.sigmoid(out)


if __name__ == "__main__":
    # Small shapes consistent with the module: groups=3 => 3 input channels.
    N, C, H, W = 2, 3, 16, 16
    Cout = 32  # Focus ConvModule output channels (synthetic, YOLO-ish)

    key = jax.random.PRNGKey(0)
    kx, kw, kg, kb, km, kv = jax.random.split(key, 6)

    x = jax.random.normal(kx, (N, C, H, W), jnp.float32)
    conv_w = 0.1 * jax.random.normal(kw, (Cout, 4 * C, 3, 3), jnp.float32)
    bn_gamma = 1.0 + 0.1 * jax.random.normal(kg, (Cout,), jnp.float32)
    bn_beta = 0.1 * jax.random.normal(kb, (Cout,), jnp.float32)
    bn_mean = 0.1 * jax.random.normal(km, (Cout,), jnp.float32)
    bn_var = 1.0 + 0.1 * jax.random.uniform(kv, (Cout,), jnp.float32)

    out = gconv_focus_forward(x, conv_w, bn_gamma, bn_beta, bn_mean, bn_var)
    out = jax.block_until_ready(out)
    assert out.shape == (N, Cout, H // 2, W // 2), out.shape

    ref = reference_forward(x, conv_w, bn_gamma, bn_beta, bn_mean, bn_var)
    ref = jax.block_until_ready(ref)
    # bf16 matmul operands (f32 accumulation) => slightly looser tolerance.
    assert jnp.allclose(out, ref, rtol=3e-2, atol=3e-2), (
        float(jnp.max(jnp.abs(out - ref))))

    print("KERNEL_OK")
</pallas_src>

<mosaic_0001>
module attributes {stable_mosaic.version = 11 : i64} {
  func.func @_focus_conv_kernel(%arg0: i32, %arg1: i32, %arg2: memref<1x64x128xbf16, #tpu.memory_space<vmem>>, %arg3: memref<128x128xbf16, #tpu.memory_space<vmem>>, %arg4: memref<1x128xf32, #tpu.memory_space<vmem>>, %arg5: memref<1x64x128xf32, #tpu.memory_space<vmem>>) attributes {dimension_semantics = [#tpu.dimension_semantics<parallel>, #tpu.dimension_semantics<parallel>], iteration_bounds = array<i64: 2, 1>, scalar_prefetch = 0 : i64, scratch_operands = 0 : i64, tpu.core_type = #tpu.core_type<tc>, window_params = [{transform_indices = @transform_0, window_bounds = array<i64: 1, 64, 128>}, {pipeline_mode = #tpu.pipeline_mode<synchronous>, transform_indices = @transform_1, window_bounds = array<i64: 128, 128>}, {pipeline_mode = #tpu.pipeline_mode<synchronous>, transform_indices = @transform_2, window_bounds = array<i64: 1, 128>}, {transform_indices = @transform_3, window_bounds = array<i64: 1, 64, 128>}]} {
    %c0 = arith.constant 0 : index
    %c0_0 = arith.constant 0 : index
    %c0_1 = arith.constant 0 : index
    %0 = vector.load %arg2[%c0, %c0_0, %c0_1] : memref<1x64x128xbf16, #tpu.memory_space<vmem>>, vector<1x64x128xbf16>
    %1 = vector.shape_cast %0 : vector<1x64x128xbf16> to vector<64x128xbf16>
    %c0_2 = arith.constant 0 : index
    %c0_3 = arith.constant 0 : index
    %2 = vector.load %arg3[%c0_2, %c0_3] : memref<128x128xbf16, #tpu.memory_space<vmem>>, vector<128x128xbf16>
    %cst = arith.constant dense<0.000000e+00> : vector<64x128xf32>
    %3 = tpu.matmul %1, %2, %cst {dimension_numbers = #tpu.dot_dimension_numbers<[1], [0], [0], [1], [0, 0, 1, 1], [], []>} : vector<64x128xbf16>, vector<128x128xbf16>, vector<64x128xf32> -> vector<64x128xf32>
    %c0_4 = arith.constant 0 : index
    %c0_5 = arith.constant 0 : index
    %4 = vector.load %arg4[%c0_4, %c0_5] : memref<1x128xf32, #tpu.memory_space<vmem>>, vector<1x128xf32>
    %5 = vector.broadcast %4 : vector<1x128xf32> to vector<64x128xf32>
    %6 = arith.addf %3, %5 : vector<64x128xf32>
    %7 = arith.negf %6 : vector<64x128xf32>
    %8 = math.exp %7 : vector<64x128xf32>
    %cst_6 = arith.constant 1.000000e+00 : f32
    %9 = vector.broadcast %cst_6 : f32 to vector<64x128xf32>
    %10 = arith.addf %9, %8 : vector<64x128xf32>
    %11 = arith.divf %9, %10 : vector<64x128xf32>
    %12 = arith.mulf %6, %11 : vector<64x128xf32>
    %c0_7 = arith.constant 0 : index
    %c0_8 = arith.constant 0 : index
    %c0_9 = arith.constant 0 : index
    %13 = vector.load %arg5[%c0_7, %c0_8, %c0_9] : memref<1x64x128xf32, #tpu.memory_space<vmem>>, vector<1x64x128xf32>
    %14 = vector.shape_cast %13 : vector<1x64x128xf32> to vector<64x128xf32>
    %15 = vector.shape_cast %12 : vector<64x128xf32> to vector<1x64x128xf32>
    tpu.vector_store %arg5[%c0_7, %c0_8, %c0_9], %15 {strides = array<i32>} : memref<1x64x128xf32, #tpu.memory_space<vmem>>, vector<1x64x128xf32>,
    return
  }
  func.func @transform_0(%arg0: i32, %arg1: i32) -> (i32, i32, i32) {
    %c0_i32 = arith.constant 0 : i32
    %c0_i32_0 = arith.constant 0 : i32
    return %arg0, %arg1, %c0_i32 : i32, i32, i32
  }
  func.func @transform_1(%arg0: i32, %arg1: i32) -> (i32, i32) {
    %c0_i32 = arith.constant 0 : i32
    %c0_i32_0 = arith.constant 0 : i32
    %c0_i32_1 = arith.constant 0 : i32
    return %c0_i32, %c0_i32_0 : i32, i32
  }
  func.func @transform_2(%arg0: i32, %arg1: i32) -> (i32, i32) {
    %c0_i32 = arith.constant 0 : i32
    %c0_i32_0 = arith.constant 0 : i32
    %c0_i32_1 = arith.constant 0 : i32
    return %c0_i32, %c0_i32_0 : i32, i32
  }
  func.func @transform_3(%arg0: i32, %arg1: i32) -> (i32, i32, i32) {
    %c0_i32 = arith.constant 0 : i32
    %c0_i32_0 = arith.constant 0 : i32
    return %arg0, %arg1, %c0_i32 : i32, i32, i32
  }
}

</mosaic_0001>

<bundles_post_ra>
// kernel: tpu_custom_call.1
= control target key start
LH: loop header
LB: loop body
LE: loop exit
PB: predicated region body
PF: predicated region fallthrough
CT: control target
= control target key end

     0   :  { %s1321_s0 = inlined_call_operand.hbm [shape: bf16[2,64,128], index: 0, kind: input, shape index: {}]   ;;  %s1322_s1 = inlined_call_operand.hbm [shape: bf16[128,128], index: 1, kind: input, shape index: {}]   ;;  %s1323_s2 = inlined_call_operand.vmem [shape: f32[1,128], index: 2, kind: input, shape index: {}]   ;;  %s1324_s3 = inlined_call_operand.hbm [shape: f32[2,64,128], index: 3, kind: output, shape index: {}]  }
   0x1   :  { %1326 = sst [smem:[#allocation11_spill]] %s1322_s1 }
   0x2   :  { %8 = vsyncpa [#allocation3], 0 }
   0x3   :  { %10 = vsyncpa [#allocation3 + $0x1], 0 }
   0x4   :  { %11 = vsyncpa [#allocation6], 0 }
   0x5   :  { %12 = vsyncpa [#allocation4], 0 }
   0x6   :  { %14 = vsyncpa [#allocation4 + $0x1], 0  ;;  %s1034_s12 = smov 0   ;;  %s1036_s13 = smov 0  }
   0x7   :  { %s1038_s14 = smov 0   ;;  %s1040_s15 = smov 0  }
   0x8   :  { %s1042_s16 = smov 0   ;;  %s1044_s17 = smov 0  }
   0x9 LB: > { %s640_s18 = sadd.s32 4294967295, %s1007_s17   ;;  %s641_s19 = sadd.s32 4294967294, %s1007_s17   ;;  %s1007_s17 = sphi %s1044_s17, %s20_s17   ;;  %s1003_s16 = sphi %s1042_s16, %s1348_s16   ;;  %s999_s15 = sphi %s1040_s15, %s1347_s15   ;;  %s995_s14 = sphi %s1038_s14, %s1346_s14   ;;  %s991_s13 = sphi %s1036_s13, %s1345_s13   ;;  %s987_s12 = sphi %s1034_s12, %s1344_s12  }
   0xa   : > { %p54_p0 = scmp.ne.s32.totalorder %s991_s13, %s987_s12  ;;  %p1068_p1 = scmp.eq.s32.totalorder %s640_s18, 0 }
   0xb   : > { %p1072_p2 = scmp.eq.s32.totalorder %s640_s18, 1  ;;  %p128_p3 = scmp.eq.s32.totalorder %s641_s19, 1 }
   0xc   : > { %p1078_p4 = por %p1068_p1, %p54_p0  ;;  %p642_p5 = scmp.ge.s32.totalorder %s1007_s17, 1 }
   0xd   : > { %p1083_p6 = por %p128_p3, %p54_p0  ;;  %p135_p7 = scmp.lt.s32.totalorder %s1007_s17, 3 }
   0xe   : > { %s1331_s1 = sld [smem:[#allocation11_spill]]  ;;  %s1009_s28 = smov [#allocation5]  }
   0xf   : > { %p1091_p8 = pnand %p642_p5, %p135_p7  ;;  %s148_s29 = sshll.u32 %s1009_s28, 4  ;;  %s149_s29 = int_to_ptr.vmem [resolvable:$true] %s148_s29 }
  0x10   : > { %p644_p11 = scmp.ge.s32.totalorder %s1007_s17, 2  ;;  %s1325_s30 = smov 64  }
  0x11   : > { %p759_p9 = pneg %p1091_p8  ;;  %s1011_s4 = smov 4  }
  0x12   : > { %s32_s5 = sadd.s32 1, %s1003_s16  ;;  %s41_s6 = sadd.s32 1, %s995_s14 }
  0x13   : > { %p760_p10 = pnand %p759_p9, %p1068_p1  ;;  %p34_p12 = scmp.ge.s32.totalorder %s32_s5, 2 }
  0x14   : > { %s146_s26 = sshll.u32 %s1331_s1, 4  ;;  %p48_p13 = scmp.ne.s32.totalorder %s995_s14, %s991_s13  ;;  %s147_s26 = int_to_ptr.hbm [resolvable:$true] %s146_s26 }
  0x15   : > { %762 = dma.hbm_to_vmem [thread:$0]  (!%p760_p10), %s147_s26, 1024, %s149_s29, [#allocation6], %s1325_s30, %s1325_s30, %s1011_s4  }
  0x16   : > { %p49_p0 = scmp.eq.s32.totalorder %s1007_s17, 0  ;;  %s1350_s5 = smov (%p34_p12, %s32_s5), 0 }
  0x17   : > { %p1116_p5 = por %p1072_p2, %p48_p13  ;;  %s36_s9 = ssub.s32 %s1003_s16, %s1350_s5 }
  0x18   : > { %p1110_p3 = por %p49_p0, %p48_p13  ;;  %p772_p7 = scmp.lt.s32.totalorder %s1007_s17, 2 }
  0x19   : > { %p39_p9 = scmp.eq.s32.totalorder %s36_s9, 0  ;;  %s165_s10 = sand.u32 1, %s995_s14  }
  0x1a   : > { %s645_s11 = sshll.u32 %s165_s10, 5  ;;  %s713_s19 = sshll.u32 %s1003_s16, 5 }
  0x1b   : > { %s1125_s18 = scalar_select %p39_p9, %s995_s14, %s41_s6  }
  0x1c   : > { %s176_s26 = scalar_lea.hbm %s1321_s0, %s713_s19  ;;  %s169_s28 = scalar_lea.vmem [#allocation2], %s645_s11 }
  0x1d   : > { %s179_s29 = sshll.u32 %s169_s28, 4  ;;  %s177_s21 = sshll.u32 %s176_s26, 4  ;;  %s180_s29 = int_to_ptr.vmem [resolvable:$true] %s179_s29  ;;  %s178_s21 = int_to_ptr.hbm [resolvable:$true] %s177_s21 }
  0x1e   : > { %p764_p2 = pnand %p772_p7, %p1110_p3  ;;  %s166_s30 = scalar_lea.sflag [#allocation3], %s165_s10 }
  0x1f   : > { %s1335_s1 = smov 64   ;;  %191 = sbr.rel (%p1091_p8) target bundleno = 254 (0xfe), region = 32 }
  0x20   : > { %766 = dma.hbm_to_vmem [thread:$0]  (!%p764_p2), %s178_s21, 512, %s180_s29, %s166_s30, %s1335_s1, %s1335_s1, %s1011_s4  }
  0x21   : > { %s1139_s6 = sand.u32 (!%p1091_p8), 1, %s991_s13  }
  0x22   : > { %s649_s9 = sshll.u32 (!%p1091_p8), %s1139_s6, 5  ;;  %s194_s11 = scalar_lea.sflag (!%p1091_p8), [#allocation3], %s1139_s6 }
  0x23   : > { %s1143_s19 = scalar_lea.vmem (!%p1091_p8), [#allocation2], %s649_s9 }
  0x24   : > { %974 = dma.done.wait (%p1078_p4), %s194_s11, 512  }
  0x25   : > { %976 = vsyncadd (%p1078_p4), %s194_s11, 4294966784 }
  0x26   : > { %978 = dma.done.wait (%p1068_p1), [#allocation6], 1024  }
  0x27   : > { %980 = vsyncadd (%p1068_p1), [#allocation6], 4294966272  ;;  %v725_v0 = vld [vmem:[#allocation5 + $0x38] sm:$0xff]  ;;  %v724_v1 = vld [vmem:[#allocation5 + $0x30] sm:$0xff]  ;;  %s651_s22 = sshll.u32 %s1139_s6, 6  ;;  %s726_s30 = sshll.u32 %s999_s15, 6 }
  0x28   : > { %328 = vmatpush.bf16.msra.mxu0 %v725_v0  ;;  %727 = vmatpush.bf16.msra.mxu1 %v725_v0  ;;  %v723_v2 = vld [vmem:[#allocation5 + $0x28] sm:$0xff]  ;;  %v722_v3 = vld [vmem:[#allocation5 + $0x20] sm:$0xff]  ;;  %v721_v4 = vld [vmem:[#allocation5 + $0x18] sm:$0xff]  ;;  %s1224_s27 = scalar_lea.vmem [#allocation7], %s651_s22  ;;  %s539_s15 = scalar_lea.hbm %s1324_s3, %s726_s30 }
  0x29   : > { %728 = vmatpush.bf16.msra.mxu2 %v725_v0  ;;  %729 = vmatpush.bf16.msra.mxu3 %v725_v0  ;;  %v720_v5 = vld [vmem:[#allocation5 + $0x10] sm:$0xff]  ;;  %v719_v6 = vld [vmem:[#allocation5 + $0x8] sm:$0xff]  ;;  %v718_v7 = vld [vmem:[#allocation5] sm:$0xff]  ;;  %s540_s10 = sshll.u32 %s1224_s27, 4  ;;  %s542_s24 = sshll.u32 %s539_s15, 4  ;;  %s541_s10 = int_to_ptr.vmem [resolvable:$true] %s540_s10  ;;  %s543_s24 = int_to_ptr.hbm [resolvable:$true] %s542_s24 }
  0x2a   : > { %v714_v8 = vld [vmem:[%s1143_s19] sm:$0xff]  ;;  %v715_v9 = vld [vmem:[%s1143_s19 + $0x8] sm:$0xff]  ;;  %v716_v10 = vld [vmem:[%s1143_s19 + $0x10] sm:$0xff]  ;;  %s526_s25 = scalar_lea.sflag [#allocation4], %s1139_s6  ;;  %s935_s26 = sshra.s32 %s543_s24, 4  ;;  %s936_s26 = int_to_ptr.hbm [resolvable:$true] %s935_s26 }
  0x2b   : > { %v717_v11 = vld [vmem:[%s1143_s19 + $0x18] sm:$0xff]  ;;  %v828_v12 = vld [vmem:[%s1323_s2] ss:$0 sm:$0xff]  ;;  %s937_s28 = scalar_lea.hbm %s936_s26, 64  ;;  %s941_s9 = scalar_lea.hbm %s1324_s3, 128 }
  0x2c   : > { %329 = vmatpush.bf16.msra.mxu0 %v724_v1  ;;  %730 = vmatpush.bf16.msra.mxu1 %v724_v1  ;;  %p938_p1 = scmp.ne.s32.totalorder %s936_s26, %s937_s28  ;;  %p942_p10 = scmp.lt.s32.totalorder %s936_s26, %s1324_s3 }
  0x2d   : > { %731 = vmatpush.bf16.msra.mxu2 %v724_v1  ;;  %732 = vmatpush.bf16.msra.mxu3 %v724_v1  ;;  %p943_p12 = scmp.lt.s32.totalorder %s941_s9, %s937_s28 }
  0x2e   : > { %p939_p4 = pnand %p938_p1, %p1116_p5 }
  0x2f   : > { %p944_p13 = por %p943_p12, %p942_p10 }
  0x30   : > { %330 = vmatpush.bf16.msra.mxu0 %v723_v2  ;;  %733 = vmatpush.bf16.msra.mxu1 %v723_v2  ;;  %p940_p8 = pneg %p939_p4 }
  0x31   : > { %734 = vmatpush.bf16.msra.mxu2 %v723_v2  ;;  %735 = vmatpush.bf16.msra.mxu3 %v723_v2 }
  0x32   : > { %p945_p0 = pnand %p944_p13, %p940_p8 }
  0x34   : > { %331 = vmatpush.bf16.msra.mxu0 %v722_v3  ;;  %736 = vmatpush.bf16.msra.mxu1 %v722_v3 }
  0x35   : > { %737 = vmatpush.bf16.msra.mxu2 %v722_v3  ;;  %738 = vmatpush.bf16.msra.mxu3 %v722_v3 }
  0x38   : > { %332 = vmatpush.bf16.msra.mxu0 %v721_v4  ;;  %739 = vmatpush.bf16.msra.mxu1 %v721_v4 }
  0x39   : > { %740 = vmatpush.bf16.msra.mxu2 %v721_v4  ;;  %741 = vmatpush.bf16.msra.mxu3 %v721_v4 }
  0x3c   : > { %333 = vmatpush.bf16.msra.mxu0 %v720_v5  ;;  %742 = vmatpush.bf16.msra.mxu1 %v720_v5 }
  0x3d   : > { %743 = vmatpush.bf16.msra.mxu2 %v720_v5  ;;  %744 = vmatpush.bf16.msra.mxu3 %v720_v5 }
  0x40   : > { %334 = vmatpush.bf16.msra.mxu0 %v719_v6  ;;  %745 = vmatpush.bf16.msra.mxu1 %v719_v6 }
  0x41   : > { %746 = vmatpush.bf16.msra.mxu2 %v719_v6  ;;  %747 = vmatpush.bf16.msra.mxu3 %v719_v6 }
  0x44   : > { %335 = vmatpush.bf16.msra.mxu0 %v718_v7  ;;  %748 = vmatpush.bf16.msra.mxu1 %v718_v7 }
  0x45   : > { %749 = vmatpush.bf16.msra.mxu2 %v718_v7  ;;  %750 = vmatpush.bf16.msra.mxu3 %v718_v7 }
  0x47   : > { %336 = vmatmul.bf16.vlgmr.msra.gmra.mxu0 %v714_v8  ;;  %341 = vmatmul.bf16.vlgmr.msra.gmra.mxu1 %v715_v9 }
  0x48   : > { %346 = vmatmul.bf16.vlgmr.msra.gmra.mxu2 %v716_v10  ;;  %351 = vmatmul.bf16.vlgmr.msra.gmra.mxu3 %v717_v11 }
  0xc4   : > { %v337_v13 = vpop.f32.mrf.mxu0  ;;  %v342_v14 = vpop.f32.mrf.mxu1 }
  0xc5   : > { %v1160_v15 = vadd.f32 %v828_v12, %v337_v13  ;;  %v1162_v16 = vadd.f32 %v828_v12, %v342_v14 }
  0xc7   : > { %v700_v17 = vmul.f32 -1.442695, %v1160_v15  ;;  %v702_v18 = vmul.f32 -1.442695, %v1162_v16 }
  0xc9   : > { %829 = vpow2.f32 %v700_v17 }
  0xca   : > { %831 = vpow2.f32 %v702_v18 }
  0xcb   : > { %v347_v19 = vpop.f32.mrf.mxu2  ;;  %v352_v20 = vpop.f32.mrf.mxu3 }
  0xcc   : > { %v1166_v21 = vadd.f32 %v828_v12, %v347_v19  ;;  %v1168_v22 = vadd.f32 %v828_v12, %v352_v20  ;;  %v339_v23 = vpop.f32.mrf.mxu0  ;;  %v344_v24 = vpop.f32.mrf.mxu1 }
  0xcd   : > { %v1170_v25 = vadd.f32 %v828_v12, %v339_v23  ;;  %v1172_v26 = vadd.f32 %v828_v12, %v344_v24 }
  0xce   : > { %v704_v27 = vmul.f32 -1.442695, %v1166_v21  ;;  %v706_v28 = vmul.f32 -1.442695, %v1168_v22 }
  0xcf   : > { %v830_v29 = vpop.eup %829  ;;  %v701_v32 = vmul.f32 -1.442695, %v1170_v25  ;;  %v703_v34 = vmul.f32 -1.442695, %v1172_v26 }
  0xd0   : > { %v832_v30 = vpop.eup %831  ;;  %v381_v31 = vadd.f32 1.0, %v830_v29  ;;  %833 = vpow2.f32 %v704_v27 }
  0xd1   : > { %v383_v33 = vadd.f32 1.0, %v832_v30  ;;  %835 = vpow2.f32 %v706_v28 }
  0xd2   : > { %837 = vrcp.f32 %v381_v31  ;;  %v398_v43 = vand.u32 2147483647, %v381_v31  ;;  %vm394_vm0 = vweird.f32 %v381_v31  ;;  %v400_v49 = vand.u32 2147483648, %v381_v31 }
  0xd3   : > { %839 = vrcp.f32 %v383_v33  ;;  %v349_v35 = vpop.f32.mrf.mxu2  ;;  %v354_v36 = vpop.f32.mrf.mxu3  ;;  %v428_v54 = vand.u32 2147483647, %v383_v33  ;;  %v430_v55 = vand.u32 2147483648, %v383_v33  ;;  %vm424_vm2 = vweird.f32 %v383_v33 }
  0xd4   : > { %841 = vpow2.f32 %v701_v32  ;;  %v1178_v37 = vadd.f32 %v828_v12, %v349_v35  ;;  %v1180_v39 = vadd.f32 %v828_v12, %v354_v36  ;;  %vm1190_vm1 = vcmp.eq.f32.partialorder %v398_v43, 8.507059e+37 }
  0xd5   : > { %843 = vpow2.f32 %v703_v34  ;;  %v401_v61 = vor.u32 1.1754944e-38, %v400_v49  ;;  %vm1199_vm5 = vcmp.eq.f32.partialorder %v428_v54, 8.507059e+37  ;;  %v431_v2 = vor.u32 1.1754944e-38, %v430_v55 }
  0xd6   : > { %v834_v38 = vpop.eup %833  ;;  %v705_v45 = vmul.f32 -1.442695, %v1178_v37  ;;  %v707_v51 = vmul.f32 -1.442695, %v1180_v39 }
  0xd7   : > { %v836_v40 = vpop.eup %835  ;;  %v1182_v41 = vadd.f32 1.0, %v834_v38 }
  0xd8   : > { %v838_v42 = vpop.eup %837  ;;  %v1184_v44 = vadd.f32 1.0, %v836_v40 }
  0xd9   : > { %v840_v46 = vpop.eup %839  ;;  %v390_v47 = vmul.f32 %v838_v42, %v381_v31  ;;  %845 = vrcp.f32 %v1182_v41  ;;  %vm395_vm3 = vweird.f32 %v838_v42  ;;  %vm454_vm7 = vweird.f32 %v1182_v41 }
  0xda   : > { %v842_v48 = vpop.eup %841  ;;  %v420_v50 = vmul.f32 %v840_v46, %v383_v33  ;;  %847 = vrcp.f32 %v1184_v44  ;;  %vm425_vm4 = vweird.f32 %v840_v46  ;;  %vm396_vm6 = vmor %vm394_vm0, %vm395_vm3  ;;  %v458_v5 = vand.u32 2147483647, %v1182_v41 }
  0xdb   : > { %v844_v52 = vpop.eup %843  ;;  %v391_v53 = vsub.f32 1.0, %v390_v47  ;;  %849 = vpow2.f32 %v705_v45  ;;  %v1194_v59 = vadd.f32 1.0, %v842_v48  ;;  %vm426_vm8 = vmor %vm424_vm2, %vm425_vm4  ;;  %v460_v8 = vand.u32 2147483648, %v1182_v41 }
  0xdc   : > { %v421_v57 = vsub.f32 1.0, %v420_v50  ;;  %v1196_v60 = vadd.f32 1.0, %v844_v52  ;;  %851 = vpow2.f32 %v707_v51  ;;  %v488_v9 = vand.u32 2147483647, %v1184_v44 }
  0xdd   : > { %v392_v58 = vmul.f32 %v838_v42, %v391_v53  ;;  %853 = vrcp.f32 %v1194_v59  ;;  %vm484_vm9 = vweird.f32 %v1184_v44  ;;  %v490_v19 = vand.u32 2147483648, %v1184_v44 }
  0xde   : > { %v422_v62 = vmul.f32 %v840_v46, %v421_v57  ;;  %855 = vrcp.f32 %v1196_v60  ;;  %vm1227_vm11 = vcmp.eq.f32.partialorder %v458_v5, 8.507059e+37  ;;  %v461_v29 = vor.u32 1.1754944e-38, %v460_v8 }
  0xdf   : > { %v846_v63 = vpop.eup %845  ;;  %v393_v0 = vadd.f32 %v838_v42, %v392_v58  ;;  %vm1231_vm12 = vcmp.eq.f32.partialorder %v488_v9, 8.507059e+37  ;;  %v491_v35 = vor.u32 1.1754944e-38, %v490_v19  ;;  %vm409_vm15 = vweird.f32 %v1194_v59 }
  0xe0   : > { %v423_v3 = vadd.f32 %v840_v46, %v422_v62  ;;  %v450_v4 = vmul.f32 %v846_v63, %v1182_v41  ;;  %v848_v6 = vpop.eup %847  ;;  %vm455_vm10 = vweird.f32 %v846_v63  ;;  %v413_v41 = vand.u32 2147483647, %v1194_v59 }
  0xe1   : > { %v397_v7 = vsel %vm396_vm6, %v838_v42, %v393_v0  ;;  %v850_v10 = vpop.eup %849  ;;  %v480_v14 = vmul.f32 %v848_v6, %v1184_v44  ;;  %vm485_vm13 = vweird.f32 %v848_v6  ;;  %vm456_vm14 = vmor %vm454_vm7, %vm455_vm10  ;;  %v443_v52 = vand.u32 2147483647, %v1196_v60 }
  0xe2   : > { %v402_v11 = vsel %vm1190_vm1, %v401_v61, %v397_v7  ;;  %v427_v12 = vsel %vm426_vm8, %v840_v46, %v423_v3  ;;  %v451_v13 = vsub.f32 1.0, %v450_v4  ;;  %v852_v20 = vpop.eup %851  ;;  %vm486_vm0 = vmor %vm484_vm9, %vm485_vm13  ;;  %v415_v46 = vand.u32 2147483648, %v1194_v59 }
  0xe3   : > { %v509_v17 = vmul.f32 %v402_v11, %v1160_v15  ;;  %v432_v18 = vsel %vm1199_vm5, %v431_v2, %v427_v12  ;;  %v481_v27 = vsub.f32 1.0, %v480_v14  ;;  %v854_v28 = vpop.eup %853  ;;  %v1244_v36 = vadd.f32 1.0, %v852_v20 }
  0xe4   : > { %v511_v23 = vmul.f32 %v432_v18, %v1162_v16  ;;  %v452_v24 = vmul.f32 %v846_v63, %v451_v13  ;;  %v1235_v16 = vadd.f32 1.0, %v850_v10  ;;  %v405_v33 = vmul.f32 %v854_v28, %v1194_v59  ;;  %v856_v34 = vpop.eup %855 }
  0xe5   : > { %517 = vst [vmem:[%s1224_s27] sm:$0xff] %v509_v17  ;;  %v482_v32 = vmul.f32 %v848_v6, %v481_v27  ;;  %v435_v43 = vmul.f32 %v856_v34, %v1196_v60  ;;  %vm410_vm1 = vweird.f32 %v854_v28  ;;  %v445_v53 = vand.u32 2147483648, %v1196_v60 }
  0xe6   : > { %519 = vst [vmem:[%s1224_s27 + $0x10] sm:$0xff] %v511_v23  ;;  %v453_v31 = vadd.f32 %v846_v63, %v452_v24  ;;  %857 = vrcp.f32 %v1235_v16  ;;  %v406_v42 = vsub.f32 1.0, %v405_v33  ;;  %vm440_vm2 = vweird.f32 %v856_v34  ;;  %vm411_vm3 = vmor %vm409_vm15, %vm410_vm1 }
  0xe7   : > { %v483_v40 = vadd.f32 %v848_v6, %v482_v32  ;;  %v436_v50 = vsub.f32 1.0, %v435_v43  ;;  %859 = vrcp.f32 %v1244_v36  ;;  %vm414_vm4 = vcmp.eq.f32.partialorder %v413_v41, 8.507059e+37 }
  0xe8   : > { %v457_v38 = vsel %vm456_vm14, %v846_v63, %v453_v31  ;;  %v407_v49 = vmul.f32 %v854_v28, %v406_v42  ;;  %v416_v56 = vor.u32 1.1754944e-38, %v415_v46  ;;  %vm439_vm5 = vweird.f32 %v1196_v60 }
  0xe9   : > { %v462_v45 = vsel %vm1227_vm11, %v461_v29, %v457_v38  ;;  %v487_v48 = vsel %vm486_vm0, %v848_v6, %v483_v40  ;;  %v437_v55 = vmul.f32 %v856_v34, %v436_v50  ;;  %vm441_vm6 = vmor %vm439_vm5, %vm440_vm2  ;;  %vm444_vm7 = vcmp.eq.f32.partialorder %v443_v52, 8.507059e+37 }
  0xea   : > { %v513_v47 = vmul.f32 %v462_v45, %v1166_v21  ;;  %v492_v51 = vsel %vm1231_vm12, %v491_v35, %v487_v48  ;;  %v408_v54 = vadd.f32 %v854_v28, %v407_v49  ;;  %v473_v3 = vand.u32 2147483647, %v1235_v16 }
  0xeb   : > { %v515_v44 = vmul.f32 %v492_v51, %v1168_v22  ;;  %v438_v58 = vadd.f32 %v856_v34, %v437_v55  ;;  %v446_v22 = vor.u32 1.1754944e-38, %v445_v53  ;;  %v475_v4 = vand.u32 2147483648, %v1235_v16 }
  0xec   : > { %521 = vst [vmem:[%s1224_s27 + $0x20] sm:$0xff] %v513_v47  ;;  %v858_v21 = vpop.eup %857  ;;  %v412_v57 = vsel %vm411_vm3, %v854_v28, %v408_v54  ;;  %vm469_vm9 = vweird.f32 %v1235_v16  ;;  %vm474_vm11 = vcmp.eq.f32.partialorder %v473_v3, 8.507059e+37  ;;  %v505_v9 = vand.u32 2147483648, %v1244_v36 }
  0xed   : > { %523 = vst [vmem:[%s1224_s27 + $0x30] sm:$0xff] %v515_v44  ;;  %v465_v61 = vmul.f32 %v858_v21, %v1235_v16  ;;  %v417_v62 = vsel %vm414_vm4, %v416_v56, %v412_v57  ;;  %v442_v0 = vsel %vm441_vm6, %v856_v34, %v438_v58  ;;  %v860_v1 = vpop.eup %859  ;;  %vm470_vm8 = vweird.f32 %v858_v21 }
  0xee   : > { %v510_v63 = vmul.f32 %v417_v62, %v1170_v25  ;;  %v447_v2 = vsel %vm444_vm7, %v446_v22, %v442_v0  ;;  %v495_v6 = vmul.f32 %v860_v1, %v1244_v36  ;;  %vm471_vm10 = vmor %vm469_vm9, %vm470_vm8  ;;  %v476_v8 = vor.u32 1.1754944e-38, %v475_v4 }
  0xef   : > { %v466_v59 = vsub.f32 1.0, %v465_v61  ;;  %v512_v60 = vmul.f32 %v447_v2, %v1172_v26  ;;  %vm500_vm12 = vweird.f32 %v860_v1  ;;  %v503_v26 = vand.u32 2147483647, %v1244_v36 }
  0xf0   : > { %518 = vst [vmem:[%s1224_s27 + $0x8] sm:$0xff] %v510_v63  ;;  %v496_v7 = vsub.f32 1.0, %v495_v6  ;;  %vm499_vm13 = vweird.f32 %v1244_v36  ;;  %v506_v17 = vor.u32 1.1754944e-38, %v505_v9 }
  0xf1   : > { %v467_v5 = vmul.f32 %v858_v21, %v466_v59  ;;  %520 = vst [vmem:[%s1224_s27 + $0x18] sm:$0xff] %v512_v60  ;;  %vm501_vm14 = vmor %vm499_vm13, %vm500_vm12  ;;  %vm504_vm15 = vcmp.eq.f32.partialorder %v503_v26, 8.507059e+37 }
  0xf2   : > { %v497_v11 = vmul.f32 %v860_v1, %v496_v7 }
  0xf3   : > { %v468_v25 = vadd.f32 %v858_v21, %v467_v5 }
  0xf4   : > { %v498_v14 = vadd.f32 %v860_v1, %v497_v11 }
  0xf5   : > { %v472_v10 = vsel %vm471_vm10, %v858_v21, %v468_v25 }
  0xf6   : > { %v477_v12 = vsel %vm474_vm11, %v476_v8, %v472_v10  ;;  %v502_v18 = vsel %vm501_vm14, %v860_v1, %v498_v14 }
  0xf7   : > { %v514_v13 = vmul.f32 %v477_v12, %v1178_v37  ;;  %v507_v19 = vsel %vm504_vm15, %v506_v17, %v502_v18 }
  0xf8   : > { %v516_v20 = vmul.f32 %v507_v19, %v1180_v39 }
  0xf9   : > { %522 = vst [vmem:[%s1224_s27 + $0x28] sm:$0xff] %v514_v13 }
  0xfa   : > { %524 = vst [vmem:[%s1224_s27 + $0x38] sm:$0xff] %v516_v20 }
  0xfb   : > { %948 = shalt.err (!%p945_p0)
}
  0xfc   : > { %s1012_s6 = smov 128   ;;  %s1013_s1 = smov 8  }
  0xfd   : > { %757 = dma.vmem_to_hbm [thread:$0]  (%p1116_p5), %s541_s10, 1024, %s543_s24, %s526_s25, %s1012_s6, %s1012_s6, %s1013_s1  }
  0xfe PF: > { %s557_s20 = sand.u32 1, %s987_s12   ;;  %p768_p3 = pnand %p644_p11, %p1083_p6 }
  0xff   : > { %s558_s22 = scalar_lea.sflag [#allocation4], %s557_s20 }
 0x100   : > { %p769_p7 = pneg %p768_p3 }
 0x102   : > { %982 = dma.done.wait (%p769_p7), %s558_s22, 1024  }
 0x103   : > { %984 = vsyncadd (%p769_p7), %s558_s22, 4294966272  ;;  %s20_s17 = sadd.s32 1, %s1007_s17   ;;  %s1344_s12 = smov %s991_s13 }
 0x104   : > { %p17_p9 = scmp.ge.s32.totalorder %s20_s17, 4   ;;  %s1345_s13 = smov %s995_s14 }
 0x105   : > { %s1346_s14 = smov %s1125_s18  ;;  %s1347_s15 = smov %s1003_s16 }
 0x106   : > { %s1348_s16 = smov %s1350_s5  ;;  %19 = sbr.rel (!%p17_p9) target bundleno = 9 (0x9), region = 81 }
 0x10b   :  { %564 = vsyncpa [#allocation3], 1 }
 0x10c   :  { %566 = vsyncpa [#allocation3 + $0x1], 1 }
 0x10d   :  { %567 = vsyncpa [#allocation6], 1 }
 0x10e   :  { %568 = vsyncpa [#allocation4], 1 }
 0x10f   :  { %570 = vsyncpa [#allocation4 + $0x1], 1 }

</bundles_post_ra>
